<compile_context>
chip_gen: v5e
topology: v5e:2x2
jax: 0.10.0
libtpu: 0.0.40
codegen_flags: <defaults>
</compile_context>

<pallas_src>
import functools
import math

import jax
import jax.numpy as jnp
from jax.experimental import pallas as pl
from jax.experimental.pallas import tpu as pltpu


def _round_up(x, m):
    return ((x + m - 1) // m) * m


def _cdiv(a, b):
    return (a + b - 1) // b


def _default_num_cores():
    """Best-effort TensorCores-per-chip (for megacore grid sharding)."""
    try:
        kind = jax.devices()[0].device_kind.lower()
    except Exception:
        return 1
    # v4 / v5p (megacore) and v7x have 2 TensorCores; v5e / v6e have 1.
    if "v7" in kind or "v5p" in kind or "v4" in kind:
        return 2
    return 1


def _choose_tile_g(G, tile_g_max, num_cores):
    """Packed-row tile: multiple of 8 sublanes, as large as allowed."""
    t = min(_round_up(tile_g_max, 8), _round_up(G, 8))
    if num_cores > 1 and G >= 16 and _cdiv(G, t) < num_cores:
        # Split so the "parallel" grid axis can shard across TensorCores.
        t = max(8, _round_up(_cdiv(G, num_cores), 8))
    return t


# ----------------------------------------------------------------------------
# Kernel: one fused 2-layer MLP over a tile of packed edge rows.
#   s/d/e refs : (tile_g, R*node_in) , (tile_g, R*node_in) , (tile_g, R*edge_in)
#   w1*_bd     : block-diagonal slices of W1 (R copies on the diagonal)
#   w2_bd      : block-diagonal W2
#   out        : (tile_g, R*edge_out)   -- 128 lanes for edge_out=8, R=16
# ----------------------------------------------------------------------------
def _edge_mlp_kernel(s_ref, d_ref, e_ref, w1s_ref, w1d_ref, w1e_ref, b1_ref,
                     w2_ref, b2_ref, out_ref):
    cdt = w2_ref.dtype  # bf16 compute dtype for the MXU
    # Layer 1: three block-diagonal matmuls (one per concatenated input slice),
    # accumulated in f32 on the MXU.
    h = jnp.dot(s_ref[...].astype(cdt), w1s_ref[...],
                preferred_element_type=jnp.float32)
    h = h + jnp.dot(d_ref[...].astype(cdt), w1d_ref[...],
                    preferred_element_type=jnp.float32)
    h = h + jnp.dot(e_ref[...].astype(cdt), w1e_ref[...],
                    preferred_element_type=jnp.float32)
    h = jnp.maximum(h + b1_ref[...], 0.0).astype(cdt)
    # Layer 2: block-diagonal matmul, f32 accumulate, f32 bias.
    y = jnp.dot(h, w2_ref[...], preferred_element_type=jnp.float32) + b2_ref[...]
    out_ref[...] = y.astype(out_ref.dtype)


# ----------------------------------------------------------------------------
# One-time parameter packing (hoisted out of the per-call path).
# ----------------------------------------------------------------------------
def pack_edge_model_params(params, node_in_dim, *, compute_dtype=jnp.bfloat16):
    """Build block-diagonal weights / tiled biases once; reuse across calls."""
    w1, b1, w2, b2 = params["w1"], params["b1"], params["w2"], params["b2"]
    H = w1.shape[1]
    O = w2.shape[1]
    # Lane-dense packing factor: pack R edges per stored row so the output last
    # dim is R*O (= 128 for O = 8) -> unmasked full-lane stores.
    if O < 128 and 128 % O == 0:
        R = 128 // O
    else:
        R = 1
        # TODO(synk): if edge_out does not divide 128 the output block is
        # narrower than 128 lanes and stores fall back to masked vst.msk.
    eye_r = jnp.eye(R, dtype=compute_dtype)
    w1c = w1.astype(compute_dtype)
    return {
        "w1s_bd": jnp.kron(eye_r, w1c[:node_in_dim]),                 # (R*n, R*H)
        "w1d_bd": jnp.kron(eye_r, w1c[node_in_dim:2 * node_in_dim]),  # (R*n, R*H)
        "w1e_bd": jnp.kron(eye_r, w1c[2 * node_in_dim:]),             # (R*e, R*H)
        "b1_t": jnp.tile(b1.astype(jnp.float32), R).reshape(1, R * H),
        "w2_bd": jnp.kron(eye_r, w2.astype(compute_dtype)),           # (R*H, R*O)
        "b2_t": jnp.tile(b2.astype(jnp.float32), R).reshape(1, R * O),
    }


# ----------------------------------------------------------------------------
# Forward pass.
# ----------------------------------------------------------------------------
@functools.partial(jax.jit, static_argnames=("tile_g_max", "num_cores"))
def edge_model_forward(src, dest, edge_attr, u, batch, packed, *,
                       tile_g_max=1024, num_cores=None):
    """Pallas implementation of EdgeModel.forward. `u`, `batch` are unused."""
    del u, batch  # unused, exactly like the PyTorch forward
    if num_cores is None:
        num_cores = _default_num_cores()

    E, node_in = src.shape
    edge_in = edge_attr.shape[1]
    R = packed["w1s_bd"].shape[0] // node_in
    H = packed["b1_t"].shape[1] // R
    O = packed["b2_t"].shape[1] // R
    out_dtype = src.dtype

    # Pack R consecutive edges per stored row. The reshape is a free row-major
    # view; padding (a copy) is only needed when E is not a multiple of R, or
    # for very small inputs (floor of 8 packed rows).
    G = max(_cdiv(E, R), 8)
    E_pad = G * R

    def _pack(a, d):
        if E_pad != E:
            a = jnp.pad(a, ((0, E_pad - E), (0, 0)))
        return a.reshape(G, R * d)

    s2 = _pack(src, node_in)        # (G, R*node_in)
    d2 = _pack(dest, node_in)       # (G, R*node_in)
    e2 = _pack(edge_attr, edge_in)  # (G, R*edge_in)

    tile_g = _choose_tile_g(G, tile_g_max, num_cores)
    grid = (pl.cdiv(G, tile_g),)    # partial boundary block is handled by Pallas

    out2 = pl.pallas_call(
        _edge_mlp_kernel,
        out_shape=jax.ShapeDtypeStruct((G, R * O), jnp.float32),
        grid=grid,
        in_specs=[
            pl.BlockSpec((tile_g, R * node_in), lambda i: (i, 0)),   # src packed
            pl.BlockSpec((tile_g, R * node_in), lambda i: (i, 0)),   # dest packed
            pl.BlockSpec((tile_g, R * edge_in), lambda i: (i, 0)),   # edge packed
            pl.BlockSpec((R * node_in, R * H), lambda i: (0, 0)),    # W1[src] bd
            pl.BlockSpec((R * node_in, R * H), lambda i: (0, 0)),    # W1[dest] bd
            pl.BlockSpec((R * edge_in, R * H), lambda i: (0, 0)),    # W1[edge] bd
            pl.BlockSpec((1, R * H), lambda i: (0, 0)),              # b1 tiled
            pl.BlockSpec((R * H, R * O), lambda i: (0, 0)),          # W2 bd
            pl.BlockSpec((1, R * O), lambda i: (0, 0)),              # b2 tiled
        ],
        out_specs=pl.BlockSpec((tile_g, R * O), lambda i: (i, 0)),
        compiler_params=pltpu.CompilerParams(
            dimension_semantics=("parallel",),
            vmem_limit_bytes=32 * 1024 * 1024),
    )(s2, d2, e2, packed["w1s_bd"], packed["w1d_bd"], packed["w1e_bd"],
      packed["b1_t"], packed["w2_bd"], packed["b2_t"])

    # Free reshape back to one edge per row; drop padding rows.
    out = out2.reshape(G * R, O)[:E]
    return out.astype(out_dtype)


# ----------------------------------------------------------------------------
# Synthetic init + pure-JAX reference.
# ----------------------------------------------------------------------------
def init_params(key, edge_in_dim, node_in_dim, edge_out_dim, hidden_dim,
                dtype=jnp.float32):
    """Deterministic synthetic init matching nn.Linear shapes (stored transposed)."""
    d_in = edge_in_dim + 2 * node_in_dim
    k1, k2, k3, k4 = jax.random.split(key, 4)
    s1 = 1.0 / math.sqrt(d_in)
    s2 = 1.0 / math.sqrt(hidden_dim)
    return {
        "w1": jax.random.uniform(k1, (d_in, hidden_dim), dtype, -s1, s1),
        "b1": jax.random.uniform(k2, (hidden_dim,), dtype, -s1, s1),
        "w2": jax.random.uniform(k3, (hidden_dim, edge_out_dim), dtype, -s2, s2),
        "b2": jax.random.uniform(k4, (edge_out_dim,), dtype, -s2, s2),
    }


def _reference(src, dest, edge_attr, params, compute_dtype=jnp.bfloat16):
    """Pure-JAX reference mirroring the kernel's bf16 compute + f32 accumulation."""
    f32 = jnp.float32
    x = jnp.concatenate([src, dest, edge_attr], axis=1)
    x = x.astype(compute_dtype).astype(f32)
    w1 = params["w1"].astype(compute_dtype).astype(f32)
    w2 = params["w2"].astype(compute_dtype).astype(f32)
    h = jnp.maximum(x @ w1 + params["b1"].astype(f32), 0.0)
    h = h.astype(compute_dtype).astype(f32)
    return h @ w2 + params["b2"].astype(f32)


if __name__ == "__main__":
    # Small shapes consistent with the module:
    #   E (num edges) = 8, node_in_dim = 4, edge_in_dim = 6,
    #   hidden_dim = 32, edge_out_dim = 8.
    E, node_in, edge_in, hidden, edge_out = 8, 4, 6, 32, 8

    key = jax.random.PRNGKey(0)
    k_src, k_dst, k_edge, k_u, k_p = jax.random.split(key, 5)

    src = jax.random.normal(k_src, (E, node_in), jnp.float32)
    dest = jax.random.normal(k_dst, (E, node_in), jnp.float32)
    edge_attr = jax.random.normal(k_edge, (E, edge_in), jnp.float32)
    u = jax.random.normal(k_u, (2, 5), jnp.float32)        # unused by forward
    batch = jnp.zeros((E,), jnp.int32)                      # unused by forward

    params = init_params(k_p, edge_in, node_in, edge_out, hidden)

    # One-time parameter packing (hoisted out of the per-call path).
    packed = jax.block_until_ready(pack_edge_model_params(params, node_in))

    out = edge_model_forward(src, dest, edge_attr, u, batch, packed)
    out = jax.block_until_ready(out)

    ref = _reference(src, dest, edge_attr, params)
    assert out.shape == (E, edge_out), out.shape
    max_err = float(jnp.max(jnp.abs(out - ref)))
    assert jnp.allclose(out, ref, atol=1e-3, rtol=1e-3), max_err

    print("KERNEL_OK")
</pallas_src>

<mosaic_0001>
module attributes {stable_mosaic.version = 11 : i64} {
  func.func @_edge_mlp_kernel(%arg0: i32, %arg1: memref<8x64xf32, #tpu.memory_space<vmem>>, %arg2: memref<8x64xf32, #tpu.memory_space<vmem>>, %arg3: memref<8x96xf32, #tpu.memory_space<vmem>>, %arg4: memref<64x512xbf16, #tpu.memory_space<vmem>>, %arg5: memref<64x512xbf16, #tpu.memory_space<vmem>>, %arg6: memref<96x512xbf16, #tpu.memory_space<vmem>>, %arg7: memref<1x512xf32, #tpu.memory_space<vmem>>, %arg8: memref<512x128xbf16, #tpu.memory_space<vmem>>, %arg9: memref<1x128xf32, #tpu.memory_space<vmem>>, %arg10: memref<8x128xf32, #tpu.memory_space<vmem>>) attributes {dimension_semantics = [#tpu.dimension_semantics<parallel>], iteration_bounds = array<i64: 1>, scalar_prefetch = 0 : i64, scratch_operands = 0 : i64, tpu.core_type = #tpu.core_type<tc>, window_params = [{transform_indices = @transform_0, window_bounds = array<i64: 8, 64>}, {transform_indices = @transform_1, window_bounds = array<i64: 8, 64>}, {transform_indices = @transform_2, window_bounds = array<i64: 8, 96>}, {pipeline_mode = #tpu.pipeline_mode<synchronous>, transform_indices = @transform_3, window_bounds = array<i64: 64, 512>}, {pipeline_mode = #tpu.pipeline_mode<synchronous>, transform_indices = @transform_4, window_bounds = array<i64: 64, 512>}, {pipeline_mode = #tpu.pipeline_mode<synchronous>, transform_indices = @transform_5, window_bounds = array<i64: 96, 512>}, {pipeline_mode = #tpu.pipeline_mode<synchronous>, transform_indices = @transform_6, window_bounds = array<i64: 1, 512>}, {pipeline_mode = #tpu.pipeline_mode<synchronous>, transform_indices = @transform_7, window_bounds = array<i64: 512, 128>}, {pipeline_mode = #tpu.pipeline_mode<synchronous>, transform_indices = @transform_8, window_bounds = array<i64: 1, 128>}, {transform_indices = @transform_9, window_bounds = array<i64: 8, 128>}]} {
    %c0 = arith.constant 0 : index
    %c0_0 = arith.constant 0 : index
    %0 = vector.load %arg1[%c0, %c0_0] : memref<8x64xf32, #tpu.memory_space<vmem>>, vector<8x64xf32>
    %1 = arith.truncf %0 : vector<8x64xf32> to vector<8x64xbf16>
    %c0_1 = arith.constant 0 : index
    %c0_2 = arith.constant 0 : index
    %2 = vector.load %arg4[%c0_1, %c0_2] : memref<64x512xbf16, #tpu.memory_space<vmem>>, vector<64x512xbf16>
    %cst = arith.constant dense<0.000000e+00> : vector<8x512xf32>
    %3 = tpu.matmul %1, %2, %cst {dimension_numbers = #tpu.dot_dimension_numbers<[1], [0], [0], [1], [0, 0, 1, 1], [], []>} : vector<8x64xbf16>, vector<64x512xbf16>, vector<8x512xf32> -> vector<8x512xf32>
    %c0_3 = arith.constant 0 : index
    %c0_4 = arith.constant 0 : index
    %4 = vector.load %arg2[%c0_3, %c0_4] : memref<8x64xf32, #tpu.memory_space<vmem>>, vector<8x64xf32>
    %5 = arith.truncf %4 : vector<8x64xf32> to vector<8x64xbf16>
    %c0_5 = arith.constant 0 : index
    %c0_6 = arith.constant 0 : index
    %6 = vector.load %arg5[%c0_5, %c0_6] : memref<64x512xbf16, #tpu.memory_space<vmem>>, vector<64x512xbf16>
    %cst_7 = arith.constant dense<0.000000e+00> : vector<8x512xf32>
    %7 = tpu.matmul %5, %6, %cst_7 {dimension_numbers = #tpu.dot_dimension_numbers<[1], [0], [0], [1], [0, 0, 1, 1], [], []>} : vector<8x64xbf16>, vector<64x512xbf16>, vector<8x512xf32> -> vector<8x512xf32>
    %8 = arith.addf %3, %7 : vector<8x512xf32>
    %c0_8 = arith.constant 0 : index
    %c0_9 = arith.constant 0 : index
    %9 = vector.load %arg3[%c0_8, %c0_9] : memref<8x96xf32, #tpu.memory_space<vmem>>, vector<8x96xf32>
    %10 = arith.truncf %9 : vector<8x96xf32> to vector<8x96xbf16>
    %c0_10 = arith.constant 0 : index
    %c0_11 = arith.constant 0 : index
    %11 = vector.load %arg6[%c0_10, %c0_11] : memref<96x512xbf16, #tpu.memory_space<vmem>>, vector<96x512xbf16>
    %cst_12 = arith.constant dense<0.000000e+00> : vector<8x512xf32>
    %12 = tpu.matmul %10, %11, %cst_12 {dimension_numbers = #tpu.dot_dimension_numbers<[1], [0], [0], [1], [0, 0, 1, 1], [], []>} : vector<8x96xbf16>, vector<96x512xbf16>, vector<8x512xf32> -> vector<8x512xf32>
    %13 = arith.addf %8, %12 : vector<8x512xf32>
    %c0_13 = arith.constant 0 : index
    %c0_14 = arith.constant 0 : index
    %14 = vector.load %arg7[%c0_13, %c0_14] : memref<1x512xf32, #tpu.memory_space<vmem>>, vector<1x512xf32>
    %15 = vector.broadcast %14 : vector<1x512xf32> to vector<8x512xf32>
    %16 = arith.addf %13, %15 : vector<8x512xf32>
    %cst_15 = arith.constant 0.000000e+00 : f32
    %17 = vector.broadcast %cst_15 : f32 to vector<8x512xf32>
    %18 = arith.maximumf %16, %17 : vector<8x512xf32>
    %19 = arith.truncf %18 : vector<8x512xf32> to vector<8x512xbf16>
    %c0_16 = arith.constant 0 : index
    %c0_17 = arith.constant 0 : index
    %20 = vector.load %arg8[%c0_16, %c0_17] : memref<512x128xbf16, #tpu.memory_space<vmem>>, vector<512x128xbf16>
    %cst_18 = arith.constant dense<0.000000e+00> : vector<8x128xf32>
    %21 = tpu.matmul %19, %20, %cst_18 {dimension_numbers = #tpu.dot_dimension_numbers<[1], [0], [0], [1], [0, 0, 1, 1], [], []>} : vector<8x512xbf16>, vector<512x128xbf16>, vector<8x128xf32> -> vector<8x128xf32>
    %c0_19 = arith.constant 0 : index
    %c0_20 = arith.constant 0 : index
    %22 = vector.load %arg9[%c0_19, %c0_20] : memref<1x128xf32, #tpu.memory_space<vmem>>, vector<1x128xf32>
    %23 = vector.broadcast %22 : vector<1x128xf32> to vector<8x128xf32>
    %24 = arith.addf %21, %23 : vector<8x128xf32>
    %c0_21 = arith.constant 0 : index
    %c0_22 = arith.constant 0 : index
    %25 = vector.load %arg10[%c0_21, %c0_22] : memref<8x128xf32, #tpu.memory_space<vmem>>, vector<8x128xf32>
    tpu.vector_store %arg10[%c0_21, %c0_22], %24 {strides = array<i32>} : memref<8x128xf32, #tpu.memory_space<vmem>>, vector<8x128xf32>,
    return
  }
  func.func @transform_0(%arg0: i32) -> (i32, i32) {
    %c0_i32 = arith.constant 0 : i32
    %c0_i32_0 = arith.constant 0 : i32
    return %arg0, %c0_i32 : i32, i32
  }
  func.func @transform_1(%arg0: i32) -> (i32, i32) {
    %c0_i32 = arith.constant 0 : i32
    %c0_i32_0 = arith.constant 0 : i32
    return %arg0, %c0_i32 : i32, i32
  }
  func.func @transform_2(%arg0: i32) -> (i32, i32) {
    %c0_i32 = arith.constant 0 : i32
    %c0_i32_0 = arith.constant 0 : i32
    return %arg0, %c0_i32 : i32, i32
  }
  func.func @transform_3(%arg0: i32) -> (i32, i32) {
    %c0_i32 = arith.constant 0 : i32
    %c0_i32_0 = arith.constant 0 : i32
    %c0_i32_1 = arith.constant 0 : i32
    return %c0_i32, %c0_i32_0 : i32, i32
  }
  func.func @transform_4(%arg0: i32) -> (i32, i32) {
    %c0_i32 = arith.constant 0 : i32
    %c0_i32_0 = arith.constant 0 : i32
    %c0_i32_1 = arith.constant 0 : i32
    return %c0_i32, %c0_i32_0 : i32, i32
  }
  func.func @transform_5(%arg0: i32) -> (i32, i32) {
    %c0_i32 = arith.constant 0 : i32
    %c0_i32_0 = arith.constant 0 : i32
    %c0_i32_1 = arith.constant 0 : i32
    return %c0_i32, %c0_i32_0 : i32, i32
  }
  func.func @transform_6(%arg0: i32) -> (i32, i32) {
    %c0_i32 = arith.constant 0 : i32
    %c0_i32_0 = arith.constant 0 : i32
    %c0_i32_1 = arith.constant 0 : i32
    return %c0_i32, %c0_i32_0 : i32, i32
  }
  func.func @transform_7(%arg0: i32) -> (i32, i32) {
    %c0_i32 = arith.constant 0 : i32
    %c0_i32_0 = arith.constant 0 : i32
    %c0_i32_1 = arith.constant 0 : i32
    return %c0_i32, %c0_i32_0 : i32, i32
  }
  func.func @transform_8(%arg0: i32) -> (i32, i32) {
    %c0_i32 = arith.constant 0 : i32
    %c0_i32_0 = arith.constant 0 : i32
    %c0_i32_1 = arith.constant 0 : i32
    return %c0_i32, %c0_i32_0 : i32, i32
  }
  func.func @transform_9(%arg0: i32) -> (i32, i32) {
    %c0_i32 = arith.constant 0 : i32
    %c0_i32_0 = arith.constant 0 : i32
    return %arg0, %c0_i32 : i32, i32
  }
}

</mosaic_0001>

<bundles_post_ra>
// kernel: edge_model_forward.1
= control target key start
LH: loop header
LB: loop body
LE: loop exit
PB: predicated region body
PF: predicated region fallthrough
CT: control target
= control target key end

     0   :  { %vm149_vm0 = vcmask 523264   ;;  %vm486_vm1 = vcmask 785408   ;;  %s1846_s4 = inlined_call_operand.vmem [shape: bf16[64,512], index: 4, kind: input, shape index: {}]   ;;  %s1847_s3 = inlined_call_operand.vmem [shape: bf16[64,512], index: 3, kind: input, shape index: {}]   ;;  %s1848_s1 = inlined_call_operand.vmem [shape: f32[8,64], index: 1, kind: input, shape index: {}]   ;;  %s1849_s5 = inlined_call_operand.vmem [shape: bf16[96,512], index: 5, kind: input, shape index: {}]   ;;  %s1850_s0 = inlined_call_operand.vmem [shape: f32[8,64], index: 0, kind: input, shape index: {}]   ;;  %s1851_s2 = inlined_call_operand.vmem [shape: f32[8,96], index: 2, kind: input, shape index: {}]   ;;  %s1852_s8 = inlined_call_operand.vmem [shape: f32[1,128], index: 8, kind: input, shape index: {}]   ;;  %s1853_s7 = inlined_call_operand.vmem [shape: bf16[512,128], index: 7, kind: input, shape index: {}]   ;;  %s1854_s6 = inlined_call_operand.vmem [shape: f32[1,512], index: 6, kind: input, shape index: {}]   ;;  %s1855_s9 = inlined_call_operand.vmem [shape: f32[8,128], index: 9, kind: output, shape index: {}]  }
   0x1   :  { %v935_v0 = vld [vmem:[%s1846_s4 + $0x60] sm:$0xf]  ;;  %v1279_v1 = vld [vmem:[%s1846_s4 + $0x6c] sm:$0xf0]  ;;  %v1277_v2 = vld [vmem:[%s1846_s4 + $0x64] sm:$0xf] }
   0x2   :  { %v936_v3 = vor.u32 %v1279_v1, %v935_v0  ;;  %v937_v4 = vld [vmem:[%s1846_s4 + $0x70] sm:$0xf0]  ;;  %v943_v5 = vld [vmem:[%s1846_s4 + $0x68] sm:$0xf]  ;;  %v1280_v6 = vld [vmem:[%s1846_s4 + $0x74] sm:$0xf0] }
   0x3   :  { %v940_v7 = vor.u32 %v1277_v2, %v937_v4  ;;  %v944_v8 = vor.u32 %v1280_v6, %v943_v5  ;;  %v1278_v9 = vld [vmem:[%s1846_s4 + $0x6c] sm:$0xf]  ;;  %v945_v10 = vld [vmem:[%s1846_s4 + $0x78] sm:$0xf0]  ;;  %v919_v11 = vld [vmem:[%s1846_s4 + $0x40] sm:$0xf] }
   0x4   :  { %157 = vmatpush.bf16.msra.mxu0 %v936_v3  ;;  %v948_v12 = vor.u32 %v1278_v9, %v945_v10  ;;  %v1275_v13 = vld [vmem:[%s1846_s4 + $0x4c] sm:$0xf0]  ;;  %v1273_v14 = vld [vmem:[%s1846_s4 + $0x44] sm:$0xf]  ;;  %v921_v15 = vld [vmem:[%s1846_s4 + $0x50] sm:$0xf0] }
   0x5   :  { %170 = vmatpush.bf16.msra.mxu1 %v940_v7  ;;  %183 = vmatpush.bf16.msra.mxu2 %v944_v8  ;;  %v920_v16 = vor.u32 %v1275_v13, %v919_v11  ;;  %v924_v17 = vor.u32 %v1273_v14, %v921_v15  ;;  %v927_v18 = vld [vmem:[%s1846_s4 + $0x48] sm:$0xf]  ;;  %v1276_v19 = vld [vmem:[%s1846_s4 + $0x54] sm:$0xf0]  ;;  %v1274_v20 = vld [vmem:[%s1846_s4 + $0x4c] sm:$0xf] }
   0x6   :  { %196 = vmatpush.bf16.msra.mxu3 %v948_v12  ;;  %v928_v21 = vor.u32 %v1276_v19, %v927_v18  ;;  %v929_v22 = vld [vmem:[%s1846_s4 + $0x58] sm:$0xf0]  ;;  %v903_v23 = vld [vmem:[%s1846_s4 + $0x20] sm:$0xf]  ;;  %v1271_v24 = vld [vmem:[%s1846_s4 + $0x2c] sm:$0xf0] }
   0x7   :  { %v932_v25 = vor.u32 %v1274_v20, %v929_v22  ;;  %v1269_v26 = vld [vmem:[%s1846_s4 + $0x24] sm:$0xf]  ;;  %v905_v27 = vld [vmem:[%s1846_s4 + $0x30] sm:$0xf0]  ;;  %v911_v28 = vld [vmem:[%s1846_s4 + $0x28] sm:$0xf]  ;;  %v904_v29 = vor.u32 %v1271_v24, %v903_v23 }
   0x8   :  { %158 = vmatpush.bf16.msra.mxu0 %v920_v16  ;;  %v1272_v30 = vld [vmem:[%s1846_s4 + $0x34] sm:$0xf0]  ;;  %v1270_v31 = vld [vmem:[%s1846_s4 + $0x2c] sm:$0xf]  ;;  %v913_v32 = vld [vmem:[%s1846_s4 + $0x38] sm:$0xf0]  ;;  %v908_v33 = vor.u32 %v1269_v26, %v905_v27 }
   0x9   :  { %171 = vmatpush.bf16.msra.mxu1 %v924_v17  ;;  %184 = vmatpush.bf16.msra.mxu2 %v928_v21  ;;  %v912_v34 = vor.u32 %v1272_v30, %v911_v28  ;;  %v887_v35 = vld [vmem:[%s1846_s4] sm:$0xf]  ;;  %v1267_v36 = vld [vmem:[%s1846_s4 + $0xc] sm:$0xf0]  ;;  %v1265_v37 = vld [vmem:[%s1846_s4 + $0x4] sm:$0xf]  ;;  %v916_v38 = vor.u32 %v1270_v31, %v913_v32 }
   0xa   :  { %197 = vmatpush.bf16.msra.mxu3 %v932_v25  ;;  %v889_v39 = vld [vmem:[%s1846_s4 + $0x10] sm:$0xf0]  ;;  %v895_v40 = vld [vmem:[%s1846_s4 + $0x8] sm:$0xf]  ;;  %v1268_v41 = vld [vmem:[%s1846_s4 + $0x14] sm:$0xf0]  ;;  %v888_v45 = vor.u32 %v1267_v36, %v887_v35 }
   0xb   :  { %v1266_v42 = vld [vmem:[%s1846_s4 + $0xc] sm:$0xf]  ;;  %v897_v43 = vld [vmem:[%s1846_s4 + $0x18] sm:$0xf0]  ;;  %v1003_v44 = vld [vmem:[%s1847_s3 + $0x60] sm:$0xf]  ;;  %v892_v49 = vor.u32 %v1265_v37, %v889_v39  ;;  %v896_v50 = vor.u32 %v1268_v41, %v895_v40 }
   0xc   :  { %159 = vmatpush.bf16.msra.mxu0 %v904_v29  ;;  %v1263_v46 = vld [vmem:[%s1847_s3 + $0x6c] sm:$0xf0]  ;;  %v1261_v47 = vld [vmem:[%s1847_s3 + $0x64] sm:$0xf]  ;;  %v1005_v48 = vld [vmem:[%s1847_s3 + $0x70] sm:$0xf0]  ;;  %v900_v54 = vor.u32 %v1266_v42, %v897_v43 }
   0xd   :  { %172 = vmatpush.bf16.msra.mxu1 %v908_v33  ;;  %185 = vmatpush.bf16.msra.mxu2 %v912_v34  ;;  %v1011_v51 = vld [vmem:[%s1847_s3 + $0x68] sm:$0xf]  ;;  %v1264_v52 = vld [vmem:[%s1847_s3 + $0x74] sm:$0xf0]  ;;  %v1262_v53 = vld [vmem:[%s1847_s3 + $0x6c] sm:$0xf]  ;;  %v1004_v55 = vor.u32 %v1263_v46, %v1003_v44  ;;  %v1008_v58 = vor.u32 %v1261_v47, %v1005_v48 }
   0xe   :  { %198 = vmatpush.bf16.msra.mxu3 %v916_v38  ;;  %v1013_v56 = vld [vmem:[%s1847_s3 + $0x78] sm:$0xf0]  ;;  %v51_v57 = vld [vmem:[%s1848_s1] sm:$0xff]  ;;  %v1012_v59 = vor.u32 %v1264_v52, %v1011_v51  ;;  %v1259_v61 = vld [vmem:[%s1847_s3 + $0x4c] sm:$0xf0] }
   0xf   :  { %v987_v60 = vld [vmem:[%s1847_s3 + $0x40] sm:$0xf]  ;;  %v1257_v62 = vld [vmem:[%s1847_s3 + $0x44] sm:$0xf]  ;;  %v1016_v63 = vor.u32 %v1262_v53, %v1013_v56  ;;  %v52_v0 = vpack.c.bf16 %v51_v57, %v51_v57  ;;  %v989_v1 = vld [vmem:[%s1847_s3 + $0x50] sm:$0xf0] }
  0x10   :  { %160 = vmatpush.bf16.msra.mxu0 %v888_v45  ;;  %v995_v2 = vld [vmem:[%s1847_s3 + $0x48] sm:$0xf]  ;;  %v1260_v3 = vld [vmem:[%s1847_s3 + $0x54] sm:$0xf0]  ;;  %v1258_v4 = vld [vmem:[%s1847_s3 + $0x4c] sm:$0xf]  ;;  %v988_v6 = vor.u32 %v1259_v61, %v987_v60  ;;  %v992_v7 = vor.u32 %v1257_v62, %v989_v1 }
  0x11   :  { %173 = vmatpush.bf16.msra.mxu1 %v892_v49  ;;  %186 = vmatpush.bf16.msra.mxu2 %v896_v50  ;;  %v997_v5 = vld [vmem:[%s1847_s3 + $0x58] sm:$0xf0]  ;;  %v996_v8 = vor.u32 %v1260_v3, %v995_v2  ;;  %v971_v9 = vld [vmem:[%s1847_s3 + $0x20] sm:$0xf]  ;;  %v1255_v10 = vld [vmem:[%s1847_s3 + $0x2c] sm:$0xf0] }
  0x12   :  { %199 = vmatpush.bf16.msra.mxu3 %v900_v54  ;;  %v1253_v11 = vld [vmem:[%s1847_s3 + $0x24] sm:$0xf]  ;;  %v1000_v12 = vor.u32 %v1258_v4, %v997_v5  ;;  %v973_v13 = vld [vmem:[%s1847_s3 + $0x30] sm:$0xf0]  ;;  %v979_v14 = vld [vmem:[%s1847_s3 + $0x28] sm:$0xf]  ;;  %v972_v18 = vor.u32 %v1255_v10, %v971_v9 }
  0x13   :  { %949 = vmatmul.msk.bf16.vlgmr.msra.gmra.mxu0 %vm149_vm0, %v52_v0  ;;  %v1256_v15 = vld [vmem:[%s1847_s3 + $0x34] sm:$0xf0]  ;;  %v1254_v16 = vld [vmem:[%s1847_s3 + $0x2c] sm:$0xf]  ;;  %v981_v17 = vld [vmem:[%s1847_s3 + $0x38] sm:$0xf0]  ;;  %v976_v21 = vor.u32 %v1253_v11, %v973_v13 }
  0x14   :  { %292 = vmatpush.bf16.msrb.mxu0 %v1004_v55  ;;  %950 = vmatmul.msk.bf16.vlgmr.msra.gmra.mxu1 %vm149_vm0, %v52_v0  ;;  %v955_v19 = vld [vmem:[%s1847_s3] sm:$0xf]  ;;  %v1251_v20 = vld [vmem:[%s1847_s3 + $0xc] sm:$0xf0]  ;;  %v980_v22 = vor.u32 %v1256_v15, %v979_v14  ;;  %v1249_v23 = vld [vmem:[%s1847_s3 + $0x4] sm:$0xf]  ;;  %v984_v26 = vor.u32 %v1254_v16, %v981_v17 }
  0x15   :  { %305 = vmatpush.bf16.msrb.mxu1 %v1008_v58  ;;  %318 = vmatpush.bf16.msrb.mxu2 %v1012_v59  ;;  %v957_v24 = vld [vmem:[%s1847_s3 + $0x10] sm:$0xf0]  ;;  %v963_v25 = vld [vmem:[%s1847_s3 + $0x8] sm:$0xf]  ;;  %v1252_v27 = vld [vmem:[%s1847_s3 + $0x14] sm:$0xf0]  ;;  %v956_v33 = vor.u32 %v1251_v20, %v955_v19 }
  0x16   :  { %331 = vmatpush.bf16.msrb.mxu3 %v1016_v63  ;;  %951 = vmatmul.msk.bf16.vlgmr.msra.gmra.mxu2 %vm149_vm0, %v52_v0  ;;  %v1250_v28 = vld [vmem:[%s1847_s3 + $0xc] sm:$0xf]  ;;  %v965_v29 = vld [vmem:[%s1847_s3 + $0x18] sm:$0xf0]  ;;  %v1103_v30 = vld [vmem:[%s1849_s5 + $0xa0] sm:$0xf]  ;;  %v960_v37 = vor.u32 %v1249_v23, %v957_v24  ;;  %v964_v38 = vor.u32 %v1252_v27, %v963_v25 }
  0x17   :  { %952 = vmatmul.msk.bf16.vlgmr.msra.gmra.mxu3 %vm149_vm0, %v52_v0  ;;  %v1303_v31 = vld [vmem:[%s1849_s5 + $0xac] sm:$0xf0]  ;;  %v1301_v32 = vld [vmem:[%s1849_s5 + $0xa4] sm:$0xf]  ;;  %v1105_v34 = vld [vmem:[%s1849_s5 + $0xb0] sm:$0xf0]  ;;  %v968_v41 = vor.u32 %v1250_v28, %v965_v29 }
  0x18   :  { %293 = vmatpush.bf16.msrb.mxu0 %v988_v6  ;;  %v1111_v35 = vld [vmem:[%s1849_s5 + $0xa8] sm:$0xf]  ;;  %v1304_v36 = vld [vmem:[%s1849_s5 + $0xb4] sm:$0xf0]  ;;  %v1302_v39 = vld [vmem:[%s1849_s5 + $0xac] sm:$0xf]  ;;  %v1104_v42 = vor.u32 %v1303_v31, %v1103_v30  ;;  %v1108_v43 = vor.u32 %v1301_v32, %v1105_v34 }
  0x19   :  { %306 = vmatpush.bf16.msrb.mxu1 %v992_v7  ;;  %319 = vmatpush.bf16.msrb.mxu2 %v996_v8  ;;  %v1113_v40 = vld [vmem:[%s1849_s5 + $0xb8] sm:$0xf0]  ;;  %v1112_v44 = vor.u32 %v1304_v36, %v1111_v35  ;;  %v1087_v45 = vld [vmem:[%s1849_s5 + $0x80] sm:$0xf]  ;;  %v1299_v46 = vld [vmem:[%s1849_s5 + $0x8c] sm:$0xf0] }
  0x1a   :  { %332 = vmatpush.bf16.msrb.mxu3 %v1000_v12  ;;  %v1297_v47 = vld [vmem:[%s1849_s5 + $0x84] sm:$0xf]  ;;  %v1116_v48 = vor.u32 %v1302_v39, %v1113_v40  ;;  %v1089_v49 = vld [vmem:[%s1849_s5 + $0x90] sm:$0xf0]  ;;  %v1095_v50 = vld [vmem:[%s1849_s5 + $0x88] sm:$0xf]  ;;  %v1088_v55 = vor.u32 %v1299_v46, %v1087_v45 }
  0x1b   :  { %v1300_v51 = vld [vmem:[%s1849_s5 + $0x94] sm:$0xf0]  ;;  %v1298_v52 = vld [vmem:[%s1849_s5 + $0x8c] sm:$0xf]  ;;  %v1097_v53 = vld [vmem:[%s1849_s5 + $0x98] sm:$0xf0]  ;;  %v1092_v56 = vor.u32 %v1297_v47, %v1089_v49 }
  0x1c   :  { %294 = vmatpush.bf16.msrb.mxu0 %v972_v18  ;;  %v33_v54 = vld [vmem:[%s1850_s0] sm:$0xff]  ;;  %v1096_v57 = vor.u32 %v1300_v51, %v1095_v50  ;;  %v1295_v59 = vld [vmem:[%s1849_s5 + $0x6c] sm:$0xf0]  ;;  %v1100_v61 = vor.u32 %v1298_v52, %v1097_v53  ;;  %v1073_v63 = vld [vmem:[%s1849_s5 + $0x70] sm:$0xf0] }
  0x1d   :  { %307 = vmatpush.bf16.msrb.mxu1 %v976_v21  ;;  %320 = vmatpush.bf16.msrb.mxu2 %v980_v22  ;;  %v1071_v58 = vld [vmem:[%s1849_s5 + $0x60] sm:$0xf]  ;;  %v1293_v60 = vld [vmem:[%s1849_s5 + $0x64] sm:$0xf]  ;;  %v34_v62 = vpack.c.bf16 %v33_v54, %v33_v54  ;;  %v1079_v0 = vld [vmem:[%s1849_s5 + $0x68] sm:$0xf] }
  0x1e   :  { %333 = vmatpush.bf16.msrb.mxu3 %v984_v26  ;;  %v1296_v1 = vld [vmem:[%s1849_s5 + $0x74] sm:$0xf0]  ;;  %v1294_v2 = vld [vmem:[%s1849_s5 + $0x6c] sm:$0xf]  ;;  %v1081_v3 = vld [vmem:[%s1849_s5 + $0x78] sm:$0xf0]  ;;  %v1072_v4 = vor.u32 %v1295_v59, %v1071_v58  ;;  %v1076_v5 = vor.u32 %v1293_v60, %v1073_v63 }
  0x1f   :  { %v1080_v6 = vor.u32 %v1296_v1, %v1079_v0  ;;  %v1055_v7 = vld [vmem:[%s1849_s5 + $0x40] sm:$0xf]  ;;  %v1291_v8 = vld [vmem:[%s1849_s5 + $0x4c] sm:$0xf0]  ;;  %v1289_v9 = vld [vmem:[%s1849_s5 + $0x44] sm:$0xf]  ;;  %v1084_v10 = vor.u32 %v1294_v2, %v1081_v3 }
  0x20   :  { %295 = vmatpush.bf16.msrb.mxu0 %v956_v33  ;;  %v1057_v11 = vld [vmem:[%s1849_s5 + $0x50] sm:$0xf0]  ;;  %v1063_v12 = vld [vmem:[%s1849_s5 + $0x48] sm:$0xf]  ;;  %v1292_v13 = vld [vmem:[%s1849_s5 + $0x54] sm:$0xf0]  ;;  %v1056_v16 = vor.u32 %v1291_v8, %v1055_v7 }
  0x21   :  { %308 = vmatpush.bf16.msrb.mxu1 %v960_v37  ;;  %321 = vmatpush.bf16.msrb.mxu2 %v964_v38  ;;  %v1290_v14 = vld [vmem:[%s1849_s5 + $0x4c] sm:$0xf]  ;;  %v1065_v15 = vld [vmem:[%s1849_s5 + $0x58] sm:$0xf0]  ;;  %v1060_v17 = vor.u32 %v1289_v9, %v1057_v11  ;;  %v1064_v18 = vor.u32 %v1292_v13, %v1063_v12  ;;  %v1039_v19 = vld [vmem:[%s1849_s5 + $0x20] sm:$0xf] }
  0x22   :  { %334 = vmatpush.bf16.msrb.mxu3 %v968_v41  ;;  %v1287_v20 = vld [vmem:[%s1849_s5 + $0x2c] sm:$0xf0]  ;;  %v1285_v21 = vld [vmem:[%s1849_s5 + $0x24] sm:$0xf]  ;;  %v1068_v22 = vor.u32 %v1290_v14, %v1065_v15  ;;  %v1041_v23 = vld [vmem:[%s1849_s5 + $0x30] sm:$0xf0] }
  0x23   :  { %1017 = vmatmul.msk.bf16.vlgmr.msrb.gmra.mxu0 %vm149_vm0, %v34_v62  ;;  %v1047_v24 = vld [vmem:[%s1849_s5 + $0x28] sm:$0xf]  ;;  %v1288_v25 = vld [vmem:[%s1849_s5 + $0x34] sm:$0xf0]  ;;  %v1286_v26 = vld [vmem:[%s1849_s5 + $0x2c] sm:$0xf]  ;;  %v1040_v28 = vor.u32 %v1287_v20, %v1039_v19  ;;  %v1044_v29 = vor.u32 %v1285_v21, %v1041_v23 }
  0x24   :  { %492 = vmatpush.bf16.msra.mxu0 %v1104_v42  ;;  %1018 = vmatmul.msk.bf16.vlgmr.msrb.gmra.mxu1 %vm149_vm0, %v34_v62  ;;  %v1049_v27 = vld [vmem:[%s1849_s5 + $0x38] sm:$0xf0]  ;;  %v1048_v30 = vor.u32 %v1288_v25, %v1047_v24  ;;  %v1023_v31 = vld [vmem:[%s1849_s5] sm:$0xf]  ;;  %v1283_v32 = vld [vmem:[%s1849_s5 + $0xc] sm:$0xf0] }
  0x25   :  { %505 = vmatpush.bf16.msra.mxu1 %v1108_v43  ;;  %518 = vmatpush.bf16.msra.mxu2 %v1112_v44  ;;  %v1281_v33 = vld [vmem:[%s1849_s5 + $0x4] sm:$0xf]  ;;  %v1052_v34 = vor.u32 %v1286_v26, %v1049_v27  ;;  %v1025_v35 = vld [vmem:[%s1849_s5 + $0x10] sm:$0xf0]  ;;  %v1031_v36 = vld [vmem:[%s1849_s5 + $0x8] sm:$0xf]  ;;  %v1024_v40 = vor.u32 %v1283_v32, %v1023_v31 }
  0x26   :  { %531 = vmatpush.bf16.msra.mxu3 %v1116_v48  ;;  %1019 = vmatmul.msk.bf16.vlgmr.msrb.gmra.mxu2 %vm149_vm0, %v34_v62  ;;  %v1284_v37 = vld [vmem:[%s1849_s5 + $0x14] sm:$0xf0]  ;;  %v1282_v38 = vld [vmem:[%s1849_s5 + $0xc] sm:$0xf]  ;;  %v1033_v39 = vld [vmem:[%s1849_s5 + $0x18] sm:$0xf0]  ;;  %v1028_v42 = vor.u32 %v1281_v33, %v1025_v35 }
  0x27   :  { %1020 = vmatmul.msk.bf16.vlgmr.msrb.gmra.mxu3 %vm149_vm0, %v34_v62  ;;  %v340_v41 = vld [vmem:[%s1851_s2] sm:$0xff]  ;;  %v1032_v43 = vor.u32 %v1284_v37, %v1031_v36  ;;  %v1036_v44 = vor.u32 %v1282_v38, %v1033_v39  ;;  %v1312_v46 = vld [vmem:[%s1853_s7 + $0x38] sm:$0xff]  ;;  %v1311_v48 = vld [vmem:[%s1853_s7 + $0x30] sm:$0xff] }
  0x28   :  { %493 = vmatpush.bf16.msra.mxu0 %v1088_v55  ;;  %v341_v45 = vpack.c.bf16 %v340_v41, %v340_v41  ;;  %v1320_v47 = vld [vmem:[%s1853_s7 + $0x78] sm:$0xff]  ;;  %v1319_v49 = vld [vmem:[%s1853_s7 + $0x70] sm:$0xff]  ;;  %v1310_v52 = vld [vmem:[%s1853_s7 + $0x28] sm:$0xff] }
  0x29   :  { %506 = vmatpush.bf16.msra.mxu1 %v1092_v56  ;;  %519 = vmatpush.bf16.msra.mxu2 %v1096_v57  ;;  %v1328_v50 = vld [vmem:[%s1853_s7 + $0xb8] sm:$0xff]  ;;  %v1318_v53 = vld [vmem:[%s1853_s7 + $0x68] sm:$0xff]  ;;  %v1327_v54 = vld [vmem:[%s1853_s7 + $0xb0] sm:$0xff] }
  0x2a   :  { %532 = vmatpush.bf16.msra.mxu3 %v1100_v61  ;;  %v1336_v51 = vld [vmem:[%s1853_s7 + $0xf8] sm:$0xff]  ;;  %v1335_v55 = vld [vmem:[%s1853_s7 + $0xf0] sm:$0xff]  ;;  %v1309_v56 = vld [vmem:[%s1853_s7 + $0x20] sm:$0xff] }
  0x2b   :  { %v1317_v57 = vld [vmem:[%s1853_s7 + $0x60] sm:$0xff]  ;;  %v1326_v58 = vld [vmem:[%s1853_s7 + $0xa8] sm:$0xff]  ;;  %v1308_v60 = vld [vmem:[%s1853_s7 + $0x18] sm:$0xff] }
  0x2c   :  { %494 = vmatpush.bf16.msra.mxu0 %v1072_v4  ;;  %v1334_v59 = vld [vmem:[%s1853_s7 + $0xe8] sm:$0xff]  ;;  %v1316_v61 = vld [vmem:[%s1853_s7 + $0x58] sm:$0xff]  ;;  %v1325_v63 = vld [vmem:[%s1853_s7 + $0xa0] sm:$0xff] }
  0x2d   :  { %507 = vmatpush.bf16.msra.mxu1 %v1076_v5  ;;  %520 = vmatpush.bf16.msra.mxu2 %v1080_v6  ;;  %v1333_v0 = vld [vmem:[%s1853_s7 + $0xe0] sm:$0xff]  ;;  %v1307_v2 = vld [vmem:[%s1853_s7 + $0x10] sm:$0xff]  ;;  %v1324_v4 = vld [vmem:[%s1853_s7 + $0x98] sm:$0xff] }
  0x2e   :  { %533 = vmatpush.bf16.msra.mxu3 %v1084_v10  ;;  %v1315_v3 = vld [vmem:[%s1853_s7 + $0x50] sm:$0xff]  ;;  %v1332_v5 = vld [vmem:[%s1853_s7 + $0xd8] sm:$0xff]  ;;  %v1306_v6 = vld [vmem:[%s1853_s7 + $0x8] sm:$0xff] }
  0x2f   :  { %v1314_v7 = vld [vmem:[%s1853_s7 + $0x48] sm:$0xff]  ;;  %v1323_v11 = vld [vmem:[%s1853_s7 + $0x90] sm:$0xff]  ;;  %v1305_v14 = vld [vmem:[%s1853_s7] sm:$0xff] }
  0x30   :  { %495 = vmatpush.bf16.msra.mxu0 %v1056_v16  ;;  %v1331_v12 = vld [vmem:[%s1853_s7 + $0xd0] sm:$0xff]  ;;  %v1313_v15 = vld [vmem:[%s1853_s7 + $0x40] sm:$0xff]  ;;  %v1322_v16 = vld [vmem:[%s1853_s7 + $0x88] sm:$0xff] }
  0x31   :  { %508 = vmatpush.bf16.msra.mxu1 %v1060_v17  ;;  %521 = vmatpush.bf16.msra.mxu2 %v1064_v18  ;;  %v1330_v17 = vld [vmem:[%s1853_s7 + $0xc8] sm:$0xff]  ;;  %v1321_v20 = vld [vmem:[%s1853_s7 + $0x80] sm:$0xff] }
  0x32   :  { %534 = vmatpush.bf16.msra.mxu3 %v1068_v22  ;;  %v1329_v21 = vld [vmem:[%s1853_s7 + $0xc0] sm:$0xff] }
  0x34   :  { %496 = vmatpush.bf16.msra.mxu0 %v1040_v28  ;;  %v546_v28 = vld [vmem:[%s1854_s6] sm:$0xf] }
  0x35   :  { %509 = vmatpush.bf16.msra.mxu1 %v1044_v29  ;;  %522 = vmatpush.bf16.msra.mxu2 %v1048_v30  ;;  %v548_v32 = vperm.slane %v546_v28, 0  ;;  %v549_v35 = vperm.slane %v546_v28, 1 }
  0x36   :  { %535 = vmatpush.bf16.msra.mxu3 %v1052_v34 }
  0x38   :  { %497 = vmatpush.bf16.msra.mxu0 %v1024_v40 }
  0x39   :  { %510 = vmatpush.bf16.msra.mxu1 %v1028_v42  ;;  %523 = vmatpush.bf16.msra.mxu2 %v1032_v43 }
  0x3a   :  { %536 = vmatpush.bf16.msra.mxu3 %v1036_v44  ;;  %v550_v44 = vperm.slane %v546_v28, 2 }
  0x3b   :  { %1117 = vmatmul.msk.bf16.vlgmr.msra.gmra.mxu0 %vm486_vm1, %v341_v45 }
  0x3c   :  { %1118 = vmatmul.msk.bf16.vlgmr.msra.gmra.mxu1 %vm486_vm1, %v341_v45  ;;  %1119 = vmatmul.msk.bf16.vlgmr.msra.gmra.mxu2 %vm486_vm1, %v341_v45 }
  0x3d   :  { %1120 = vmatmul.msk.bf16.vlgmr.msra.gmra.mxu3 %vm486_vm1, %v341_v45  ;;  %828 = vmatpush.bf16.msrb.mxu0 %v1312_v46 }
  0x3e   :  { %841 = vmatpush.bf16.msrb.mxu1 %v1320_v47  ;;  %854 = vmatpush.bf16.msrb.mxu2 %v1328_v50 }
  0x3f   :  { %867 = vmatpush.bf16.msrb.mxu3 %v1336_v51 }
  0x41   :  { %829 = vmatpush.bf16.msrb.mxu0 %v1311_v48  ;;  %v551_v48 = vperm.slane %v546_v28, 3 }
  0x42   :  { %842 = vmatpush.bf16.msrb.mxu1 %v1319_v49  ;;  %855 = vmatpush.bf16.msrb.mxu2 %v1327_v54 }
  0x43   :  { %868 = vmatpush.bf16.msrb.mxu3 %v1335_v55 }
  0x45   :  { %830 = vmatpush.bf16.msrb.mxu0 %v1310_v52 }
  0x46   :  { %843 = vmatpush.bf16.msrb.mxu1 %v1318_v53  ;;  %856 = vmatpush.bf16.msrb.mxu2 %v1326_v58 }
  0x47   :  { %869 = vmatpush.bf16.msrb.mxu3 %v1334_v59 }
  0x49   :  { %831 = vmatpush.bf16.msrb.mxu0 %v1309_v56 }
  0x4a   :  { %844 = vmatpush.bf16.msrb.mxu1 %v1317_v57  ;;  %857 = vmatpush.bf16.msrb.mxu2 %v1325_v63 }
  0x4b   :  { %870 = vmatpush.bf16.msrb.mxu3 %v1333_v0 }
  0x4d   :  { %832 = vmatpush.bf16.msrb.mxu0 %v1308_v60 }
  0x4e   :  { %845 = vmatpush.bf16.msrb.mxu1 %v1316_v61  ;;  %858 = vmatpush.bf16.msrb.mxu2 %v1324_v4 }
  0x4f   :  { %871 = vmatpush.bf16.msrb.mxu3 %v1332_v5 }
  0x51   :  { %833 = vmatpush.bf16.msrb.mxu0 %v1307_v2 }
  0x52   :  { %846 = vmatpush.bf16.msrb.mxu1 %v1315_v3  ;;  %859 = vmatpush.bf16.msrb.mxu2 %v1323_v11 }
  0x53   :  { %872 = vmatpush.bf16.msrb.mxu3 %v1331_v12 }
  0x55   :  { %834 = vmatpush.bf16.msrb.mxu0 %v1306_v6 }
  0x56   :  { %847 = vmatpush.bf16.msrb.mxu1 %v1314_v7  ;;  %860 = vmatpush.bf16.msrb.mxu2 %v1322_v16 }
  0x57   :  { %873 = vmatpush.bf16.msrb.mxu3 %v1330_v17 }
  0x59   :  { %835 = vmatpush.bf16.msrb.mxu0 %v1305_v14 }
  0x5a   :  { %848 = vmatpush.bf16.msrb.mxu1 %v1313_v15  ;;  %861 = vmatpush.bf16.msrb.mxu2 %v1321_v20 }
  0x5b   :  { %874 = vmatpush.bf16.msrb.mxu3 %v1329_v21 }
  0x90   :  { %v162_v62 = vpop.f32.mrf.mxu0 }
  0x91   :  { %v175_v1 = vpop.f32.mrf.mxu1 }
  0x98   :  { %v164_v10 = vpop.f32.mrf.mxu0 }
  0x99   :  { %v188_v8 = vpop.f32.mrf.mxu2  ;;  %v177_v13 = vpop.f32.mrf.mxu1 }
  0x9a   :  { %v201_v9 = vpop.f32.mrf.mxu3 }
  0xa0   :  { %v297_v22 = vpop.f32.mrf.mxu0 }
  0xa1   :  { %v190_v18 = vpop.f32.mrf.mxu2  ;;  %v310_v23 = vpop.f32.mrf.mxu1  ;;  %v298_v30 = vadd.f32 %v297_v22, %v162_v62 }
  0xa2   :  { %v203_v19 = vpop.f32.mrf.mxu3  ;;  %v311_v33 = vadd.f32 %v310_v23, %v175_v1  ;;  %v1337_v1 = vld [vmem:[%s1852_s8] ss:$0 sm:$0xff] }
  0xa8   :  { %v299_v26 = vpop.f32.mrf.mxu0 }
  0xa9   :  { %v323_v24 = vpop.f32.mrf.mxu2  ;;  %v312_v27 = vpop.f32.mrf.mxu1 }
  0xaa   :  { %v336_v25 = vpop.f32.mrf.mxu3  ;;  %v324_v42 = vadd.f32 %v323_v24, %v188_v8 }
  0xab   :  { %v337_v45 = vadd.f32 %v336_v25, %v201_v9 }
  0xb1   :  { %v325_v29 = vpop.f32.mrf.mxu2 }
  0xb2   :  { %v338_v31 = vpop.f32.mrf.mxu3 }
  0xb8   :  { %v499_v34 = vpop.f32.mrf.mxu0 }
  0xb9   :  { %v542_v36 = vadd.f32 %v499_v34, %v298_v30  ;;  %v512_v37 = vpop.f32.mrf.mxu1 }
  0xba   :  { %v543_v38 = vadd.f32 %v512_v37, %v311_v33 }
  0xbb   :  { %v556_v39 = vadd.f32 %v548_v32, %v542_v36 }
  0xbc   :  { %v557_v40 = vadd.f32 %v549_v35, %v543_v38 }
  0xbd   :  { %v560_v41 = vmax.f32 %v556_v39, 0.0 }
  0xbe   :  { %v561_v43 = vmax.f32 %v557_v40, 0.0 }
  0xbf   :  { %v564_v46 = vpack.c.bf16 %v560_v41, %v560_v41  ;;  %v525_v47 = vpop.f32.mrf.mxu2 }
  0xc0   :  { %v565_v49 = vpack.c.bf16 %v561_v43, %v561_v43  ;;  %v544_v50 = vadd.f32 %v525_v47, %v324_v42  ;;  %v538_v51 = vpop.f32.mrf.mxu3  ;;  %v501_v52 = vpop.f32.mrf.mxu0 }
  0xc1   :  { %v545_v53 = vadd.f32 %v538_v51, %v337_v45  ;;  %836 = vmatmul.bf16.vlgmr.msrb.gmra.mxu0 %v564_v46  ;;  %v514_v54 = vpop.f32.mrf.mxu1 }
  0xc2   :  { %v558_v55 = vadd.f32 %v550_v44, %v544_v50  ;;  %849 = vmatmul.bf16.vlgmr.msrb.gmra.mxu1 %v565_v49 }
  0xc3   :  { %v559_v56 = vadd.f32 %v551_v48, %v545_v53 }
  0xc4   :  { %v562_v57 = vmax.f32 %v558_v55, 0.0 }
  0xc5   :  { %v563_v58 = vmax.f32 %v559_v56, 0.0 }
  0xc6   :  { %v566_v59 = vpack.c.bf16 %v562_v57, %v562_v57 }
  0xc7   :  { %v567_v60 = vpack.c.bf16 %v563_v58, %v563_v58  ;;  %v527_v61 = vpop.f32.mrf.mxu2 }
  0xc8   :  { %v540_v62 = vpop.f32.mrf.mxu3  ;;  %862 = vmatmul.bf16.vlgmr.msrb.gmra.mxu2 %v566_v59 }
  0xc9   :  { %875 = vmatmul.bf16.vlgmr.msrb.gmra.mxu3 %v567_v60 }
 0x13e   :  { %v837_v63 = vpop.f32.mrf.mxu0 }
 0x13f   :  { %v850_v0 = vpop.f32.mrf.mxu1  ;;  %v838_v2 = vadd.f32 %v1337_v1, %v837_v63 }
 0x141   :  { %v851_v5 = vadd.f32 %v850_v0, %v838_v2 }
 0x146   :  { %v839_v3 = vpop.f32.mrf.mxu0 }
 0x147   :  { %v852_v4 = vpop.f32.mrf.mxu1 }
 0x14b   :  { %v863_v6 = vpop.f32.mrf.mxu2 }
 0x14c   :  { %v864_v7 = vadd.f32 %v863_v6, %v851_v5  ;;  %v876_v8 = vpop.f32.mrf.mxu3 }
 0x14e   :  { %v877_v9 = vadd.f32 %v876_v8, %v864_v7 }
 0x150   :  { %880 = vst [vmem:[%s1855_s9] sm:$0xff] %v877_v9 }
 0x153   :  { %v865_v10 = vpop.f32.mrf.mxu2 }
 0x154   :  { %v878_v11 = vpop.f32.mrf.mxu3 }

</bundles_post_ra>
